<compile_context>
chip_gen: v7x
topology: tpu7x:2x2x1
jax: 0.10.0
libtpu: 0.0.40
codegen_flags: <defaults>
</compile_context>

<pallas_src>
import functools

import jax
import jax.numpy as jnp
from jax import lax
from jax.experimental import pallas as pl
from jax.experimental.pallas import tpu as pltpu


def fused_cnn_encoder_kernel(tok_ref, table_ref, b_ref, o_ref, *,
                             Ks, T, V, CO_PAD):
    """Embedding gather + multi-size conv + time max-pool + bias + ReLU, fused.

    tok_ref:   [1, T, 1] int32            token ids for this batch row (VMEM)
    table_ref: [V, sum(Ks)*CO_PAD] bf16   folded emb@conv tables, lane-padded (VMEM)
    b_ref:     [1, len(Ks)*CO_PAD] f32    conv biases, lane-padded (VMEM)
    o_ref:     [1, 1, len(Ks)*CO_PAD] f32 pooled features, lane-padded (VMEM)
    """
    tok = tok_ref[0]                                               # [T, 1] int32

    # Exact embedding "gather" folded into the conv matmul: one-hot @ table.
    vocab_ids = lax.broadcasted_iota(jnp.int32, (T, V), 1)         # [T, V]
    one_hot = (vocab_ids == tok).astype(jnp.bfloat16)              # [T, V]
    y = jnp.dot(one_hot, table_ref[...],
                preferred_element_type=jnp.float32)                # [T, sum(K)*CO_PAD]

    # Shift-accumulate over kernel height k (lane-aligned 128-wide blocks),
    # then global max over time per branch.
    pooled = []
    blk = 0
    for K in Ks:                                                   # static unroll
        L = T - K + 1
        acc = y[0:L, blk * CO_PAD:(blk + 1) * CO_PAD]              # [L, CO_PAD]
        for k in range(1, K):
            acc = acc + y[k:k + L, (blk + k) * CO_PAD:(blk + k + 1) * CO_PAD]
        pooled.append(jnp.max(acc, axis=0, keepdims=True))         # [1, CO_PAD]
        blk += K

    row = jnp.concatenate(pooled, axis=1)                          # [1, NOUT*CO_PAD]
    # Bias-add and ReLU commute with the time max (monotone), so this matches
    # PyTorch's max_pool(relu(conv(x)+b)) order. Single lane-dense store.
    o_ref[0] = jnp.maximum(row + b_ref[...], 0.0)


@jax.jit
def cnn_encoder_forward(tokens, embedding, conv_ws, conv_bs):
    """Full CNNEncoder.forward. Returns (features, None, None) like PyTorch.

    tokens:    [B, T] int
    embedding: [V, E] f32                 (nn.Embedding.weight)
    conv_ws:   list of [Co, 1, K, E] f32  (nn.Conv2d.weight, PyTorch layout)
    conv_bs:   list of [Co] f32           (nn.Conv2d.bias)
    """
    B, T = tokens.shape
    V, E = embedding.shape
    Ks = tuple(int(w.shape[2]) for w in conv_ws)
    Co = int(conv_ws[0].shape[0])
    n_branch = len(Ks)
    CO_PAD = ((Co + 127) // 128) * 128                             # lane-aligned block

    # Fold embedding @ conv weights into one lane-padded lookup table:
    # column block (branch i, shift k) holds emb @ w_i[k] padded to CO_PAD lanes.
    blocks = []
    for w in conv_ws:                                              # [Co, 1, K, E]
        K = int(w.shape[2])
        wk = jnp.transpose(w[:, 0], (1, 2, 0))                     # [K, E, Co]
        for k in range(K):
            t = jnp.dot(embedding.astype(jnp.float32),
                        wk[k].astype(jnp.float32),
                        precision=lax.Precision.HIGHEST)           # [V, Co]
            blocks.append(jnp.pad(t, ((0, 0), (0, CO_PAD - Co))))
    fused_table = jnp.concatenate(blocks, axis=1).astype(jnp.bfloat16)  # [V, sum(K)*CO_PAD]

    bias = jnp.concatenate(
        [jnp.pad(b.reshape(1, Co).astype(jnp.float32),
                 ((0, 0), (0, CO_PAD - Co))) for b in conv_bs],
        axis=1)                                                    # [1, n_branch*CO_PAD]

    tok3 = tokens.astype(jnp.int32).reshape(B, T, 1)               # [B, T, 1]

    kernel = functools.partial(
        fused_cnn_encoder_kernel, Ks=Ks, T=T, V=V, CO_PAD=CO_PAD)

    out_pad = pl.pallas_call(
        kernel,
        out_shape=jax.ShapeDtypeStruct((B, 1, n_branch * CO_PAD), jnp.float32),
        grid_spec=pltpu.PrefetchScalarGridSpec(
            num_scalar_prefetch=0,
            grid=(B,),
            in_specs=[
                pl.BlockSpec((1, T, 1), lambda b: (b, 0, 0)),               # tokens
                pl.BlockSpec((V, sum(Ks) * CO_PAD), lambda b: (0, 0)),      # table (resident)
                pl.BlockSpec((1, n_branch * CO_PAD), lambda b: (0, 0)),     # bias (resident)
            ],
            out_specs=pl.BlockSpec((1, 1, n_branch * CO_PAD),
                                   lambda b: (b, 0, 0)),
        ),
        compiler_params=pltpu.CompilerParams(
            dimension_semantics=("parallel",)),
    )(tok3, fused_table, bias)

    # Strip lane padding and restore torch.cat(branch features, dim=1) layout.
    out = out_pad.reshape(B, n_branch, CO_PAD)[:, :, :Co].reshape(B, n_branch * Co)
    # nn.Dropout: identity at inference (deterministic forward).
    return out, None, None


if __name__ == "__main__":
    # opt: vSize=100, iSize=32, kn=8, ks="3,4,5", dpt (identity in eval)
    V, E, Co = 100, 32, 8
    Ks = (3, 4, 5)
    B, T = 2, 16

    key = jax.random.PRNGKey(0)
    k_tok, k_emb, k_w, k_b = jax.random.split(key, 4)

    tokens = jax.random.randint(k_tok, (B, T), 0, V, dtype=jnp.int32)
    embedding = jax.random.normal(k_emb, (V, E), dtype=jnp.float32) * 0.1

    conv_ws, conv_bs = [], []
    wkeys = jax.random.split(k_w, len(Ks))
    bkeys = jax.random.split(k_b, len(Ks))
    for i, K in enumerate(Ks):
        conv_ws.append(jax.random.normal(wkeys[i], (Co, 1, K, E), jnp.float32) * 0.1)
        conv_bs.append(jax.random.normal(bkeys[i], (Co,), jnp.float32) * 0.01)

    out, hidden, extra = cnn_encoder_forward(tokens, embedding, conv_ws, conv_bs)
    out = jax.block_until_ready(out)
    assert out.shape == (B, Co * len(Ks)), out.shape
    assert hidden is None and extra is None

    # Reference 1: same math / dtype path as the kernel (bf16 fused table, f32 acc).
    # Reference 2: pure-f32, PyTorch op order (gather -> conv -> +b -> relu -> max).
    x_emb = embedding[tokens]                                      # [B, T, E]
    ref_q_blocks, ref_f32_blocks = [], []
    for w, b in zip(conv_ws, conv_bs):
        K = int(w.shape[2])
        L = T - K + 1
        wk = jnp.transpose(w[:, 0], (1, 2, 0))                     # [K, E, Co]
        # bf16-table path (kernel numerics)
        tabs = [jnp.dot(embedding, wk[k], precision=lax.Precision.HIGHEST)
                .astype(jnp.bfloat16).astype(jnp.float32) for k in range(K)]
        acc = tabs[0][tokens][:, 0:L, :]
        for k in range(1, K):
            acc = acc + tabs[k][tokens][:, k:k + L, :]
        ref_q_blocks.append(jnp.maximum(jnp.max(acc, axis=1) + b[None, :], 0.0))
        # full-f32 PyTorch order
        h = sum(jnp.einsum("ble,ec->blc", x_emb[:, k:k + L, :], wk[k],
                           precision=lax.Precision.HIGHEST) for k in range(K))
        h = jnp.maximum(h + b[None, None, :], 0.0)
        ref_f32_blocks.append(jnp.max(h, axis=1))
    ref_q = jnp.concatenate(ref_q_blocks, axis=1)
    ref_f32 = jnp.concatenate(ref_f32_blocks, axis=1)

    assert jnp.allclose(out, ref_q, atol=5e-4, rtol=1e-3), (out, ref_q)
    assert float(jnp.max(jnp.abs(out - ref_f32))) < 1e-2, (out, ref_f32)

    print("KERNEL_OK")
</pallas_src>

<mosaic_0001>
module attributes {stable_mosaic.version = 11 : i64} {
  func.func @fused_cnn_encoder_kernel(%arg0: i32, %arg1: memref<1x16x1xi32, #tpu.memory_space<vmem>>, %arg2: memref<100x1536xbf16, #tpu.memory_space<vmem>>, %arg3: memref<1x384xf32, #tpu.memory_space<vmem>>, %arg4: memref<1x1x384xf32, #tpu.memory_space<vmem>>) attributes {dimension_semantics = [#tpu.dimension_semantics<parallel>], iteration_bounds = array<i64: 2>, scalar_prefetch = 0 : i64, scratch_operands = 0 : i64, tpu.core_type = #tpu.core_type<tc>, window_params = [{transform_indices = @transform_0, window_bounds = array<i64: 1, 16, 1>}, {pipeline_mode = #tpu.pipeline_mode<synchronous>, transform_indices = @transform_1, window_bounds = array<i64: 100, 1536>}, {pipeline_mode = #tpu.pipeline_mode<synchronous>, transform_indices = @transform_2, window_bounds = array<i64: 1, 384>}, {transform_indices = @transform_3, window_bounds = array<i64: 1, 1, 384>}]} {
    %c0 = arith.constant 0 : index
    %c0_0 = arith.constant 0 : index
    %c0_1 = arith.constant 0 : index
    %0 = vector.load %arg1[%c0, %c0_0, %c0_1] : memref<1x16x1xi32, #tpu.memory_space<vmem>>, vector<1x16x1xi32>
    %1 = vector.shape_cast %0 : vector<1x16x1xi32> to vector<16x1xi32>
    %2 = tpu.iota {dimensions = array<i32: 1>} : vector<16x100xi32>
    %3 = vector.broadcast %1 : vector<16x1xi32> to vector<16x100xi32>
    %4 = arith.cmpi eq, %2, %3 : vector<16x100xi32>
    %5 = arith.extui %4 : vector<16x100xi1> to vector<16x100xi32>
    %6 = arith.sitofp %5 : vector<16x100xi32> to vector<16x100xf32>
    %7 = arith.truncf %6 : vector<16x100xf32> to vector<16x100xbf16>
    %c0_2 = arith.constant 0 : index
    %c0_3 = arith.constant 0 : index
    %8 = vector.load %arg2[%c0_2, %c0_3] : memref<100x1536xbf16, #tpu.memory_space<vmem>>, vector<100x1536xbf16>
    %cst = arith.constant dense<0.000000e+00> : vector<16x1536xf32>
    %9 = tpu.matmul %7, %8, %cst {dimension_numbers = #tpu.dot_dimension_numbers<[1], [0], [0], [1], [0, 0, 1, 1], [], []>} : vector<16x100xbf16>, vector<100x1536xbf16>, vector<16x1536xf32> -> vector<16x1536xf32>
    %10 = vector.extract_strided_slice %9 {offsets = [0, 0], sizes = [14, 128], strides = [1, 1]} : vector<16x1536xf32> to vector<14x128xf32>
    %11 = vector.extract_strided_slice %9 {offsets = [1, 128], sizes = [14, 128], strides = [1, 1]} : vector<16x1536xf32> to vector<14x128xf32>
    %12 = arith.addf %10, %11 : vector<14x128xf32>
    %13 = vector.extract_strided_slice %9 {offsets = [2, 256], sizes = [14, 128], strides = [1, 1]} : vector<16x1536xf32> to vector<14x128xf32>
    %14 = arith.addf %12, %13 : vector<14x128xf32>
    %cst_4 = arith.constant dense<0xFF800000> : vector<128xf32>
    %15 = vector.multi_reduction <maximumf>, %14, %cst_4 [0] : vector<14x128xf32> to vector<128xf32>
    %16 = vector.shape_cast %15 : vector<128xf32> to vector<1x128xf32>
    %17 = vector.extract_strided_slice %9 {offsets = [0, 384], sizes = [13, 128], strides = [1, 1]} : vector<16x1536xf32> to vector<13x128xf32>
    %18 = vector.extract_strided_slice %9 {offsets = [1, 512], sizes = [13, 128], strides = [1, 1]} : vector<16x1536xf32> to vector<13x128xf32>
    %19 = arith.addf %17, %18 : vector<13x128xf32>
    %20 = vector.extract_strided_slice %9 {offsets = [2, 640], sizes = [13, 128], strides = [1, 1]} : vector<16x1536xf32> to vector<13x128xf32>
    %21 = arith.addf %19, %20 : vector<13x128xf32>
    %22 = vector.extract_strided_slice %9 {offsets = [3, 768], sizes = [13, 128], strides = [1, 1]} : vector<16x1536xf32> to vector<13x128xf32>
    %23 = arith.addf %21, %22 : vector<13x128xf32>
    %cst_5 = arith.constant dense<0xFF800000> : vector<128xf32>
    %24 = vector.multi_reduction <maximumf>, %23, %cst_5 [0] : vector<13x128xf32> to vector<128xf32>
    %25 = vector.shape_cast %24 : vector<128xf32> to vector<1x128xf32>
    %26 = vector.extract_strided_slice %9 {offsets = [0, 896], sizes = [12, 128], strides = [1, 1]} : vector<16x1536xf32> to vector<12x128xf32>
    %27 = vector.extract_strided_slice %9 {offsets = [1, 1024], sizes = [12, 128], strides = [1, 1]} : vector<16x1536xf32> to vector<12x128xf32>
    %28 = arith.addf %26, %27 : vector<12x128xf32>
    %29 = vector.extract_strided_slice %9 {offsets = [2, 1152], sizes = [12, 128], strides = [1, 1]} : vector<16x1536xf32> to vector<12x128xf32>
    %30 = arith.addf %28, %29 : vector<12x128xf32>
    %31 = vector.extract_strided_slice %9 {offsets = [3, 1280], sizes = [12, 128], strides = [1, 1]} : vector<16x1536xf32> to vector<12x128xf32>
    %32 = arith.addf %30, %31 : vector<12x128xf32>
    %33 = vector.extract_strided_slice %9 {offsets = [4, 1408], sizes = [12, 128], strides = [1, 1]} : vector<16x1536xf32> to vector<12x128xf32>
    %34 = arith.addf %32, %33 : vector<12x128xf32>
    %cst_6 = arith.constant dense<0xFF800000> : vector<128xf32>
    %35 = vector.multi_reduction <maximumf>, %34, %cst_6 [0] : vector<12x128xf32> to vector<128xf32>
    %36 = vector.shape_cast %35 : vector<128xf32> to vector<1x128xf32>
    %37 = tpu.concatenate %16, %25, %36 in 1 : vector<1x128xf32>, vector<1x128xf32>, vector<1x128xf32> -> vector<1x384xf32>
    %c0_7 = arith.constant 0 : index
    %c0_8 = arith.constant 0 : index
    %38 = vector.load %arg3[%c0_7, %c0_8] : memref<1x384xf32, #tpu.memory_space<vmem>>, vector<1x384xf32>
    %39 = arith.addf %37, %38 : vector<1x384xf32>
    %cst_9 = arith.constant 0.000000e+00 : f32
    %40 = vector.broadcast %cst_9 : f32 to vector<1x384xf32>
    %41 = arith.maximumf %39, %40 : vector<1x384xf32>
    %c0_10 = arith.constant 0 : index
    %c0_11 = arith.constant 0 : index
    %c0_12 = arith.constant 0 : index
    %42 = vector.load %arg4[%c0_10, %c0_11, %c0_12] : memref<1x1x384xf32, #tpu.memory_space<vmem>>, vector<1x1x384xf32>
    %43 = vector.shape_cast %42 : vector<1x1x384xf32> to vector<1x384xf32>
    %44 = vector.shape_cast %41 : vector<1x384xf32> to vector<1x1x384xf32>
    tpu.vector_store %arg4[%c0_10, %c0_11, %c0_12], %44 {strides = array<i32>} : memref<1x1x384xf32, #tpu.memory_space<vmem>>, vector<1x1x384xf32>,
    return
  }
  func.func @transform_0(%arg0: i32) -> (i32, i32, i32) {
    %c0_i32 = arith.constant 0 : i32
    %c0_i32_0 = arith.constant 0 : i32
    %c0_i32_1 = arith.constant 0 : i32
    return %arg0, %c0_i32, %c0_i32_0 : i32, i32, i32
  }
  func.func @transform_1(%arg0: i32) -> (i32, i32) {
    %c0_i32 = arith.constant 0 : i32
    %c0_i32_0 = arith.constant 0 : i32
    %c0_i32_1 = arith.constant 0 : i32
    return %c0_i32, %c0_i32_0 : i32, i32
  }
  func.func @transform_2(%arg0: i32) -> (i32, i32) {
    %c0_i32 = arith.constant 0 : i32
    %c0_i32_0 = arith.constant 0 : i32
    %c0_i32_1 = arith.constant 0 : i32
    return %c0_i32, %c0_i32_0 : i32, i32
  }
  func.func @transform_3(%arg0: i32) -> (i32, i32, i32) {
    %c0_i32 = arith.constant 0 : i32
    %c0_i32_0 = arith.constant 0 : i32
    %c0_i32_1 = arith.constant 0 : i32
    return %arg0, %c0_i32, %c0_i32_0 : i32, i32, i32
  }
}

</mosaic_0001>

<bundles_post_ra>
// kernel: cnn_encoder_forward.1
= control target key start
LH: loop header
LB: loop body
LE: loop exit
PB: predicated region body
PF: predicated region fallthrough
CT: control target
= control target key end

     0   :  { %s1443_s12 = smov 0   ;;  %s1760_s0 = inlined_call_operand.vmem [shape: s32[2,16,1], index: 0, kind: input, shape index: {}]   ;;  %s1761_s1 = inlined_call_operand.vmem [shape: bf16[100,1536], index: 1, kind: input, shape index: {}]   ;;  %s1762_s2 = inlined_call_operand.vmem [shape: f32[1,384], index: 2, kind: input, shape index: {}]   ;;  %s1763_s3 = inlined_call_operand.vmem [shape: f32[2,1,384], index: 3, kind: output, shape index: {}]  }
   0x1 LB: > { %s1171_s13 = sadd.s32 4294967295, %s1418_s12   ;;  %p1175_p0 = scmp.ge.s32.totalorder %s1418_s12, 1  ;;  %s1418_s12 = sphi %s1443_s12, %s13_s12  }
   0x2   : > { %p137_p1 = scmp.lt.s32.totalorder %s1418_s12, 3 }
   0x4   : > { %p138_p2 = pnand %p1175_p0, %p137_p1 }
   0x5   : > { %p160_p3 = scmp.lt.s32.totalorder (!%p138_p2), %s1171_s13, 1  ;;  %v1292_v0 = vld [vmem:[%s1761_s1 + $0x4] ss:$48 sps:$4 sm:$0xff] (!%p138_p2)   ;;  %v1420_v1 = vmov (!%p138_p2), 0   ;;  %v1294_v2 = vld [vmem:[%s1761_s1 + $0xc] ss:$48 sps:$4 sm:$0xff] (!%p138_p2)   ;;  %v172_v37 = vlaneseq (!%p138_p2) }
   0x6   : > { %141 = sbr.rel (%p138_p2) target bundleno = 459 (0x1cb), region = 32  ;;  %1291 = vset.pattern.permute.xlu0 (!%p138_p2), %v1420_v1  ;;  %728 = vmatprep.mubr.bf16.mxu0 (!%p138_p2), %v1420_v1  ;;  %v1296_v3 = vld [vmem:[%s1761_s1] ss:$48 sps:$4 sm:$0xff] (!%p138_p2)   ;;  %v1297_v4 = vld [vmem:[%s1761_s1 + $0x8] ss:$48 sps:$4 sm:$0xff] (!%p138_p2)   ;;  %vm659_vm0 = vcmask (!%p138_p2), 1041408  }
   0x7   : > { %696 = vmatprep.subr.bf16.mxu0 (!%p138_p2), %v1292_v0  ;;  %771 = vmatprep.mubr.bf16.mxu1 (!%p138_p2), %v1420_v1  ;;  %v1298_v5 = vld [vmem:[%s1761_s1 + $0x64] ss:$48 sps:$4 sm:$0xff] (!%p138_p2)   ;;  %v1300_v6 = vld [vmem:[%s1761_s1 + $0x6c] ss:$48 sps:$4 sm:$0xff] (!%p138_p2)   ;;  %v1302_v7 = vld [vmem:[%s1761_s1 + $0x60] ss:$48 sps:$4 sm:$0xff] (!%p138_p2)  }
   0x8   : > { %739 = vmatprep.subr.bf16.mxu1 (!%p138_p2), %v1294_v2  ;;  %697 = vmatpush1.bf16.msra.mxu0 (!%p138_p2), %v1296_v3  ;;  %v1303_v8 = vld [vmem:[%s1761_s1 + $0x68] ss:$48 sps:$4 sm:$0xff] (!%p138_p2)   ;;  %v1304_v11 = vld [vmem:[%s1761_s1 + $0xc4] ss:$48 sps:$4 sm:$0xff] (!%p138_p2)   ;;  %v1306_v12 = vld [vmem:[%s1761_s1 + $0xcc] ss:$48 sps:$4 sm:$0xff] (!%p138_p2)  }
   0x9   : > { %740 = vmatpush1.bf16.msra.mxu1 (!%p138_p2), %v1297_v4  ;;  %698 = vmatprep.subr.bf16.mxu0 (!%p138_p2), %v1298_v5  ;;  %v1308_v13 = vld [vmem:[%s1761_s1 + $0xc0] ss:$48 sps:$4 sm:$0xff] (!%p138_p2)   ;;  %v1309_v14 = vld [vmem:[%s1761_s1 + $0xc8] ss:$48 sps:$4 sm:$0xff] (!%p138_p2)   ;;  %v1310_v15 = vld [vmem:[%s1761_s1 + $0x124] ss:$48 sps:$4 sm:$0xff] (!%p138_p2)  }
   0xa   : > { %741 = vmatprep.subr.bf16.mxu1 (!%p138_p2), %v1300_v6  ;;  %v1312_v16 = vld [vmem:[%s1761_s1 + $0x12c] ss:$48 sps:$4 sm:$0xff] (!%p138_p2)   ;;  %v1314_v17 = vld [vmem:[%s1761_s1 + $0x120] ss:$48 sps:$4 sm:$0xff] (!%p138_p2)   ;;  %v1315_v18 = vld [vmem:[%s1761_s1 + $0x128] ss:$48 sps:$4 sm:$0xff] (!%p138_p2)  }
   0xb   : > { %v1316_v19 = vld [vmem:[%s1761_s1 + $0x184] ss:$48 sps:$4 sm:$0xff] (!%p138_p2)   ;;  %v1318_v20 = vld [vmem:[%s1761_s1 + $0x18c] ss:$48 sps:$4 sm:$0xff] (!%p138_p2)   ;;  %v1320_v21 = vld [vmem:[%s1761_s1 + $0x180] ss:$48 sps:$4 sm:$0xff] (!%p138_p2)  }
   0xc   : > { %699 = vmatpush1.bf16.msra.mxu0 (!%p138_p2), %v1302_v7  ;;  %v1321_v22 = vld [vmem:[%s1761_s1 + $0x188] ss:$48 sps:$4 sm:$0xff] (!%p138_p2)   ;;  %v1322_v23 = vld [vmem:[%s1761_s1 + $0x1e4] ss:$48 sps:$4 sm:$0xff] (!%p138_p2)   ;;  %v1324_v24 = vld [vmem:[%s1761_s1 + $0x1ec] ss:$48 sps:$4 sm:$0xff] (!%p138_p2)  }
   0xd   : > { %s1765_s13 = smov (!%p160_p3, %s1171_s13), 1  ;;  %742 = vmatpush1.bf16.msra.mxu1 %v1303_v8  ;;  %700 = vmatprep.subr.bf16.mxu0 %v1304_v11  ;;  %v259_v25 = vld [vmem:[%s1761_s1 + $0x240] sm:$0x33]  ;;  %v260_v26 = vld [vmem:[%s1761_s1 + $0x248] sm:$0x33]  ;;  %v173_v38 = vand.u32 127, %v172_v37 }
   0xe   : > { %s1278_s24 = sshll.u32 %s1765_s13, 4  ;;  %743 = vmatprep.subr.bf16.mxu1 %v1306_v12  ;;  %v1326_v27 = vld [vmem:[%s1761_s1 + $0x1e0] ss:$48 sps:$4 sm:$0xff]   ;;  %v1327_v28 = vld [vmem:[%s1761_s1 + $0x1e8] ss:$48 sps:$4 sm:$0xff]   ;;  %v1253_v29 = vcombine.high %v259_v25, %v259_v25  ;;  %v1255_v30 = vcombine.high %v260_v26, %v260_v26  ;;  %v1252_v31 = vcombine.low %v259_v25, %v259_v25  ;;  %v1254_v32 = vcombine.low %v260_v26, %v260_v26  ;;  %s1279_s26 = smul.u32 3, %s1765_s13 }
   0xf   : > { %s164_s29 = scalar_lea.vmem %s1760_s0, %s1278_s24  ;;  %v1334_v33 = vld [vmem:[%s1761_s1 + $0x14] ss:$48 sps:$4 sm:$0xff]   ;;  %v1337_v36 = vld [vmem:[%s1761_s1 + $0x1c] ss:$48 sps:$4 sm:$0xff]   ;;  %vm655_vm3 = vcmask 818176   ;;  %v1421_v41 = vmov 0.0  }
  0x10   : > { %v170_v9 = vld [vmem:[%s164_s29] sm:$0xff]  ;;  %v171_v10 = vld [vmem:[%s164_s29 + $0x8] sm:$0xff]  ;;  %701 = vmatpush1.bf16.msra.mxu0 %v1308_v13  ;;  %v661_v34 = vsel %vm659_vm0, %v1252_v31, 0  ;;  %v667_v35 = vsel %vm659_vm0, %v1254_v32, 0  ;;  %v261_v2 = vld [vmem:[%s1761_s1 + $0x250] sm:$0x33]  ;;  %s168_s29 = scalar_lea.vmem %s1763_s3, %s1279_s26 }
  0x11   : > { %175 = vperm.xlu0 %1291, %v170_v9   ;;  %744 = vmatpush1.bf16.msra.mxu1 %v1309_v14  ;;  %v1332_v44 = vld [vmem:[%s1761_s1 + $0x10] ss:$48 sps:$4 sm:$0xff]   ;;  %v1335_v45 = vld [vmem:[%s1761_s1 + $0x18] ss:$48 sps:$4 sm:$0xff]   ;;  %v1340_v47 = vld [vmem:[%s1761_s1 + $0x74] ss:$48 sps:$4 sm:$0xff]   ;;  %v1257_v6 = vcombine.high %v261_v2, %v261_v2  ;;  %v1256_v8 = vcombine.low %v261_v2, %v261_v2 }
  0x12   : > { %702 = vmatprep.subr.bf16.mxu0 %v1310_v15  ;;  %745 = vmatprep.subr.bf16.mxu1 %v1312_v16  ;;  %v1343_v48 = vld [vmem:[%s1761_s1 + $0x7c] ss:$48 sps:$4 sm:$0xff]   ;;  %v1338_v49 = vld [vmem:[%s1761_s1 + $0x70] ss:$48 sps:$4 sm:$0xff]   ;;  %v1341_v50 = vld [vmem:[%s1761_s1 + $0x78] ss:$48 sps:$4 sm:$0xff]  }
  0x13   : > { %v1346_v51 = vld [vmem:[%s1761_s1 + $0xd4] ss:$48 sps:$4 sm:$0xff]   ;;  %v1349_v52 = vld [vmem:[%s1761_s1 + $0xdc] ss:$48 sps:$4 sm:$0xff]   ;;  %v1344_v53 = vld [vmem:[%s1761_s1 + $0xd0] ss:$48 sps:$4 sm:$0xff]  }
  0x14   : > { %703 = vmatpush1.bf16.msra.mxu0 %v1314_v17  ;;  %v1347_v54 = vld [vmem:[%s1761_s1 + $0xd8] ss:$48 sps:$4 sm:$0xff]   ;;  %v1352_v55 = vld [vmem:[%s1761_s1 + $0x134] ss:$48 sps:$4 sm:$0xff]   ;;  %v1355_v56 = vld [vmem:[%s1761_s1 + $0x13c] ss:$48 sps:$4 sm:$0xff]  }
  0x15   : > { %178 = vperm.xlu0 %1291, %v171_v10   ;;  %746 = vmatpush1.bf16.msra.mxu1 %v1315_v18  ;;  %v1350_v57 = vld [vmem:[%s1761_s1 + $0x130] ss:$48 sps:$4 sm:$0xff]   ;;  %v1353_v58 = vld [vmem:[%s1761_s1 + $0x138] ss:$48 sps:$4 sm:$0xff]   ;;  %v1358_v59 = vld [vmem:[%s1761_s1 + $0x194] ss:$48 sps:$4 sm:$0xff]  }
  0x16   : > { %704 = vmatprep.subr.bf16.mxu0 %v1316_v19  ;;  %747 = vmatprep.subr.bf16.mxu1 %v1318_v20  ;;  %v1361_v60 = vld [vmem:[%s1761_s1 + $0x19c] ss:$48 sps:$4 sm:$0xff]   ;;  %v1356_v61 = vld [vmem:[%s1761_s1 + $0x190] ss:$48 sps:$4 sm:$0xff]   ;;  %v1359_v62 = vld [vmem:[%s1761_s1 + $0x198] ss:$48 sps:$4 sm:$0xff]  }
  0x17   : > { %v1364_v63 = vld [vmem:[%s1761_s1 + $0x1f4] ss:$48 sps:$4 sm:$0xff]   ;;  %v1367_v0 = vld [vmem:[%s1761_s1 + $0x1fc] ss:$48 sps:$4 sm:$0xff]   ;;  %v1362_v4 = vld [vmem:[%s1761_s1 + $0x1f0] ss:$48 sps:$4 sm:$0xff]  }
  0x18   : > { %705 = vmatpush1.bf16.msra.mxu0 %v1320_v21  ;;  %v262_v3 = vld [vmem:[%s1761_s1 + $0x258] sm:$0x33]  ;;  %v673_v10 = vsel %vm659_vm0, %v1256_v8, 0  ;;  %v1374_v12 = vld [vmem:[%s1761_s1 + $0x24] ss:$48 sps:$4 sm:$0xff]   ;;  %vm966_vm4 = vcmask 1045504  }
  0x19   : > { %748 = vmatpush1.bf16.msra.mxu1 %v1321_v22  ;;  %706 = vmatprep.subr.bf16.mxu0 %v1322_v23  ;;  %v1365_v5 = vld [vmem:[%s1761_s1 + $0x1f8] ss:$48 sps:$4 sm:$0xff]   ;;  %v1259_v7 = vcombine.high %v262_v3, %v262_v3  ;;  %v1258_v9 = vcombine.low %v262_v3, %v262_v3  ;;  %v1377_v13 = vld [vmem:[%s1761_s1 + $0x2c] ss:$48 sps:$4 sm:$0xff]   ;;  %v1372_v14 = vld [vmem:[%s1761_s1 + $0x20] ss:$48 sps:$4 sm:$0xff]  }
  0x1a   : > { %749 = vmatprep.subr.bf16.mxu1 %v1324_v24  ;;  %v1375_v15 = vld [vmem:[%s1761_s1 + $0x28] ss:$48 sps:$4 sm:$0xff]   ;;  %v1380_v16 = vld [vmem:[%s1761_s1 + $0x84] ss:$48 sps:$4 sm:$0xff]   ;;  %v1383_v17 = vld [vmem:[%s1761_s1 + $0x8c] ss:$48 sps:$4 sm:$0xff]  }
  0x1b   : > { %v679_v11 = vsel %vm659_vm0, %v1258_v9, 0  ;;  %v1378_v18 = vld [vmem:[%s1761_s1 + $0x80] ss:$48 sps:$4 sm:$0xff]   ;;  %v1381_v19 = vld [vmem:[%s1761_s1 + $0x88] ss:$48 sps:$4 sm:$0xff]   ;;  %vm956_vm5 = vcmask 1046528  }
  0x1c   : > { %707 = vmatpush1.bf16.msra.mxu0 %v1326_v27  ;;  %v1386_v20 = vld [vmem:[%s1761_s1 + $0xe4] ss:$48 sps:$4 sm:$0xff]   ;;  %v1389_v21 = vld [vmem:[%s1761_s1 + $0xec] ss:$48 sps:$4 sm:$0xff]   ;;  %v1384_v22 = vld [vmem:[%s1761_s1 + $0xe0] ss:$48 sps:$4 sm:$0xff]  }
  0x1d   : > { %750 = vmatpush1.bf16.msra.mxu1 %v1327_v28  ;;  %1264 = vmatprep.subr.msk.bf16.mxu0 %vm659_vm0, %v1253_v29  ;;  %v1387_v23 = vld [vmem:[%s1761_s1 + $0xe8] ss:$48 sps:$4 sm:$0xff]   ;;  %v1392_v24 = vld [vmem:[%s1761_s1 + $0x144] ss:$48 sps:$4 sm:$0xff]   ;;  %v1390_v25 = vld [vmem:[%s1761_s1 + $0x140] ss:$48 sps:$4 sm:$0xff]  }
  0x1e   : > { %1266 = vmatprep.subr.msk.bf16.mxu1 %vm659_vm0, %v1255_v30  ;;  %v1393_v26 = vld [vmem:[%s1761_s1 + $0x148] ss:$48 sps:$4 sm:$0xff]   ;;  %v1398_v27 = vld [vmem:[%s1761_s1 + $0x1a4] ss:$48 sps:$4 sm:$0xff]   ;;  %v1401_v28 = vld [vmem:[%s1761_s1 + $0x1ac] ss:$48 sps:$4 sm:$0xff]  }
  0x1f   : > { %v1396_v29 = vld [vmem:[%s1761_s1 + $0x1a0] ss:$48 sps:$4 sm:$0xff]   ;;  %v1399_v30 = vld [vmem:[%s1761_s1 + $0x1a8] ss:$48 sps:$4 sm:$0xff]   ;;  %v1404_v31 = vld [vmem:[%s1761_s1 + $0x204] ss:$48 sps:$4 sm:$0xff]  }
  0x20   : > { %709 = vmatpush1.bf16.msra.mxu0 %v661_v34  ;;  %v1407_v32 = vld [vmem:[%s1761_s1 + $0x20c] ss:$48 sps:$4 sm:$0xff]   ;;  %vm1002_vm6 = vcmask 1044480   ;;  %vm1047_vm7 = vcmask 1043456   ;;  %vm1115_vm8 = vcmp.lt.s32.totalorder %v172_v37, 384 }
  0x21   : > { %752 = vmatpush1.bf16.msra.mxu1 %v667_v35  ;;  %782 = vmatprep.subr.bf16.mxu0 %v1334_v33  ;;  %v263_v33 = vld [vmem:[%s1761_s1 + $0x260] sm:$0x33]  ;;  %v264_v34 = vld [vmem:[%s1761_s1 + $0x268] sm:$0x33] }
  0x22   : > { %825 = vmatprep.subr.bf16.mxu1 %v1337_v36  ;;  %v1402_v35 = vld [vmem:[%s1761_s1 + $0x200] ss:$48 sps:$4 sm:$0xff]   ;;  %v1405_v36 = vld [vmem:[%s1761_s1 + $0x208] ss:$48 sps:$4 sm:$0xff]  }
  0x90   : > { %v176_v39 = vpop.permute.xlu0 %175 }
  0x91   : > { %vm180_vm1 = vcmp.eq.s32.totalorder %v173_v38, %v176_v39  ;;  %v1263_v39 = vcombine.high %v264_v34, %v264_v34 }
  0x92   : > { %v1178_v42 = vsel %vm180_vm1, 1.0, %v1421_v41 }
  0x94   : > { %v179_v40 = vpop.permute.xlu0 %178 }
  0x95   : > { %vm181_vm2 = vcmp.eq.s32.totalorder %v173_v38, %v179_v40  ;;  %v1261_v38 = vcombine.high %v263_v33, %v263_v33  ;;  %v1260_v40 = vcombine.low %v263_v33, %v263_v33 }
  0x96   : > { %v1179_v43 = vsel %vm181_vm2, 1.0, %v1421_v41  ;;  %v1262_v41 = vcombine.low %v264_v34, %v264_v34 }
  0x97   : > { %v1555_v46 = vpack.c.bf16 %v1179_v43, %v1178_v42  ;;  %v685_v42 = vsel %vm659_vm0, %v1260_v40, 0 }
  0x98   : > { %v691_v43 = vsel %vm659_vm0, %v1262_v41, 0  ;;  %v1422_v41 = vmov 1966171168  }
  0x99   : > { %1265 = vmatmul.mubr.msk.bf16.vlgmr.msra.gmra.mrb[0].mxu0 %vm655_vm3, %v1555_v46  ;;  %1267 = vmatmul.mubr.msk.bf16.vlgmr.msra.gmra.mrb[0].mxu1 %vm655_vm3, %v1555_v46 }
  0x9a   : > { %783 = vmatpush1.bf16.msra.mxu0 %v1332_v44  ;;  %826 = vmatpush1.bf16.msra.mxu1 %v1335_v45 }
  0x9b   : > { %784 = vmatprep.subr.bf16.mxu0 %v1340_v47  ;;  %827 = vmatprep.subr.bf16.mxu1 %v1343_v48 }
  0x9c   : > { %814 = vmatprep.mubr.bf16.mxu0 %v1420_v1  ;;  %857 = vmatprep.mubr.bf16.mxu1 %v1420_v1 }
  0x9e   : > { %785 = vmatpush1.bf16.msra.mxu0 %v1338_v49  ;;  %828 = vmatpush1.bf16.msra.mxu1 %v1341_v50 }
  0x9f   : > { %786 = vmatprep.subr.bf16.mxu0 %v1346_v51  ;;  %829 = vmatprep.subr.bf16.mxu1 %v1349_v52 }
  0xa2   : > { %787 = vmatpush1.bf16.msra.mxu0 %v1344_v53  ;;  %830 = vmatpush1.bf16.msra.mxu1 %v1347_v54 }
  0xa3   : > { %788 = vmatprep.subr.bf16.mxu0 %v1352_v55  ;;  %831 = vmatprep.subr.bf16.mxu1 %v1355_v56 }
  0xa6   : > { %789 = vmatpush1.bf16.msra.mxu0 %v1350_v57  ;;  %832 = vmatpush1.bf16.msra.mxu1 %v1353_v58 }
  0xa7   : > { %790 = vmatprep.subr.bf16.mxu0 %v1358_v59  ;;  %833 = vmatprep.subr.bf16.mxu1 %v1361_v60 }
  0xaa   : > { %791 = vmatpush1.bf16.msra.mxu0 %v1356_v61  ;;  %834 = vmatpush1.bf16.msra.mxu1 %v1359_v62 }
  0xab   : > { %792 = vmatprep.subr.bf16.mxu0 %v1364_v63  ;;  %835 = vmatprep.subr.bf16.mxu1 %v1367_v0  ;;  %v1729_v0 = vshrl.u32 %v172_v37, 7 }
  0xad   : > { %v1071_v40 = vsub.s32 1, %v1729_v0 }
  0xae   : > { %793 = vmatpush1.bf16.msra.mxu0 %v1362_v4  ;;  %836 = vmatpush1.bf16.msra.mxu1 %v1365_v5  ;;  %v1067_v5 = vsub.s32 0, %v1729_v0 }
  0xaf   : > { %1268 = vmatprep.subr.msk.bf16.mxu0 %vm659_vm0, %v1257_v6  ;;  %1270 = vmatprep.subr.msk.bf16.mxu1 %vm659_vm0, %v1259_v7  ;;  %v1735_v6 = vld [vmem:[%s1762_s2] sm:$0x7] }
  0xb0   : > { %v1068_v9 = vrot.slane %v1735_v6, %v1067_v5 }
  0xb2   : > { %795 = vmatpush1.bf16.msra.mxu0 %v673_v10  ;;  %838 = vmatpush1.bf16.msra.mxu1 %v679_v11 }
  0xb3   : > { %868 = vmatprep.subr.bf16.mxu0 %v1374_v12  ;;  %911 = vmatprep.subr.bf16.mxu1 %v1377_v13 }
  0xb5   : > { %1269 = vmatmul.mubr.msk.bf16.vlgmr.msra.gmra.mrb[4].mxu0 %vm655_vm3, %v1555_v46  ;;  %1271 = vmatmul.mubr.msk.bf16.vlgmr.msra.gmra.mrb[4].mxu1 %vm655_vm3, %v1555_v46 }
  0xb6   : > { %869 = vmatpush1.bf16.msra.mxu0 %v1372_v14  ;;  %912 = vmatpush1.bf16.msra.mxu1 %v1375_v15 }
  0xb7   : > { %870 = vmatprep.subr.bf16.mxu0 %v1380_v16  ;;  %913 = vmatprep.subr.bf16.mxu1 %v1383_v17 }
  0xb8   : > { %900 = vmatprep.mubr.bf16.mxu0 %v1420_v1  ;;  %943 = vmatprep.mubr.bf16.mxu1 %v1420_v1  ;;  %v1395_v1 = vld [vmem:[%s1761_s1 + $0x14c] ss:$48 sps:$4 sm:$0xff]  }
  0xba   : > { %871 = vmatpush1.bf16.msra.mxu0 %v1378_v18  ;;  %914 = vmatpush1.bf16.msra.mxu1 %v1381_v19 }
  0xbb   : > { %872 = vmatprep.subr.bf16.mxu0 %v1386_v20  ;;  %915 = vmatprep.subr.bf16.mxu1 %v1389_v21 }
  0xbe   : > { %873 = vmatpush1.bf16.msra.mxu0 %v1384_v22  ;;  %916 = vmatpush1.bf16.msra.mxu1 %v1387_v23 }
  0xbf   : > { %874 = vmatprep.subr.bf16.mxu0 %v1392_v24  ;;  %917 = vmatprep.subr.bf16.mxu1 %v1395_v1 }
  0xc2   : > { %875 = vmatpush1.bf16.msra.mxu0 %v1390_v25  ;;  %918 = vmatpush1.bf16.msra.mxu1 %v1393_v26 }
  0xc3   : > { %876 = vmatprep.subr.bf16.mxu0 %v1398_v27  ;;  %919 = vmatprep.subr.bf16.mxu1 %v1401_v28 }
  0xc6   : > { %877 = vmatpush1.bf16.msra.mxu0 %v1396_v29  ;;  %920 = vmatpush1.bf16.msra.mxu1 %v1399_v30 }
  0xc7   : > { %878 = vmatprep.subr.bf16.mxu0 %v1404_v31  ;;  %921 = vmatprep.subr.bf16.mxu1 %v1407_v32 }
  0xca   : > { %879 = vmatpush1.bf16.msra.mxu0 %v1402_v35  ;;  %922 = vmatpush1.bf16.msra.mxu1 %v1405_v36 }
  0xcb   : > { %1272 = vmatprep.subr.msk.bf16.mxu0 %vm659_vm0, %v1261_v38  ;;  %1274 = vmatprep.subr.msk.bf16.mxu1 %vm659_vm0, %v1263_v39 }
  0xce   : > { %881 = vmatpush1.bf16.msra.mxu0 %v685_v42  ;;  %924 = vmatpush1.bf16.msra.mxu1 %v691_v43  ;;  %v1091_v42 = vunpack.c.l.s4 %v1422_v41 }
  0xd1   : > { %1273 = vmatmul.mubr.msk.bf16.vlgmr.msra.gmra.mrb[8].mxu0 %vm655_vm3, %v1555_v46  ;;  %1275 = vmatmul.mubr.msk.bf16.vlgmr.msra.gmra.mrb[8].mxu1 %vm655_vm3, %v1555_v46 }
 0x16c   : > { %v730_v44 = vpop.f32.mrb[0].mxu0  ;;  %v773_v45 = vpop.f32.mrb[0].mxu1 }
 0x16d   : > { %v732_v47 = vpop.f32.mrb[1].mxu0  ;;  %v775_v48 = vpop.f32.mrb[1].mxu1  ;;  %v967_v51 = vrot.slane %v773_v45, 2  ;;  %v1072_v45 = vrot.slane %v1735_v6, %v1071_v40 }
 0x16e   : > { %v734_v49 = vpop.f32.mrb[2].mxu0  ;;  %v777_v50 = vpop.f32.mrb[2].mxu1  ;;  %v957_v55 = vrot.slane %v732_v47, 1  ;;  %v1092_v47 = vunpack.c.0.s8 %v1091_v42 }
 0x16f   : > { %v968_v52 = vrot.slane %v777_v50, 2  ;;  %v736_v53 = vpop.f32.mrb[3].mxu0  ;;  %v779_v54 = vpop.f32.mrb[3].mxu1 }
 0x170   : > { %v958_v56 = vrot.slane %v736_v53, 1  ;;  %v1095_v50 = vsub.s32 %v1092_v47, %v1729_v0 }
 0x171   : > { %v969_v57 = vsel %vm966_vm4, %v967_v51, %v968_v52 }
 0x172   : > { %v959_v58 = vsel %vm956_vm5, %v957_v55, %v958_v56  ;;  %v963_v59 = vadd.f32 %v958_v56, %v734_v49 }
 0x173   : > { %v962_v46 = vadd.f32 %v959_v58, %v730_v44 }
 0x174   : > { %v973_v60 = vadd.f32 %v968_v52, %v963_v59 }
 0x175   : > { %v972_v61 = vadd.f32 %v969_v57, %v962_v46 }
 0x176   : > { %v974_v62 = vsel %vm966_vm4, %v973_v60, -inf }
 0x177   : > { %v975_v63 = vmax.f32 %v972_v61, %v974_v62 }
 0x179   : > { %v976_v2 = vrot.slane %v975_v63, 4 }
 0x17b   : > { %v977_v3 = vmax.f32 %v975_v63, %v976_v2 }
 0x17d   : > { %v978_v4 = vrot.slane %v977_v3, 2 }
 0x17f   : > { %v979_v7 = vmax.f32 %v977_v3, %v978_v4 }
 0x181   : > { %v980_v8 = vrot.slane %v979_v7, 1 }
 0x183   : > { %v981_v10 = vmax.f32 %v979_v7, %v980_v8 }
 0x185   : > { %v1080_v11 = vadd.f32 %v1068_v9, %v981_v10 }
 0x187   : > { %v1083_v51 = vmax.f32 %v1080_v11, 0.0 }
 0x188   : > { %v816_v12 = vpop.f32.mrb[4].mxu0  ;;  %v859_v13 = vpop.f32.mrb[4].mxu1 }
 0x189   : > { %v818_v14 = vpop.f32.mrb[5].mxu0  ;;  %v861_v15 = vpop.f32.mrb[5].mxu1  ;;  %v984_v18 = vrot.slane %v816_v12, 1  ;;  %v1003_v19 = vrot.slane %v859_v13, 3 }
 0x18a   : > { %v820_v16 = vpop.f32.mrb[6].mxu0  ;;  %v863_v17 = vpop.f32.mrb[6].mxu1  ;;  %v993_v24 = vrot.slane %v818_v14, 2 }
 0x18b   : > { %v985_v20 = vrot.slane %v820_v16, 1  ;;  %v1004_v21 = vrot.slane %v863_v17, 3  ;;  %v822_v22 = vpop.f32.mrb[7].mxu0  ;;  %v865_v23 = vpop.f32.mrb[7].mxu1 }
 0x18c   : > { %v994_v1 = vrot.slane %v822_v22, 2 }
 0x18d   : > { %v986_v25 = vsel %vm956_vm5, %v984_v18, %v985_v20  ;;  %v990_v26 = vadd.f32 %v985_v20, %v779_v54  ;;  %v1005_v27 = vsel %vm1002_vm6, %v1003_v19, %v1004_v21 }
 0x18e   : > { %v989_v28 = vadd.f32 %v986_v25, %v775_v48  ;;  %v995_v29 = vsel %vm966_vm4, %v993_v24, %v994_v1 }
 0x18f   : > { %v999_v30 = vadd.f32 %v994_v1, %v990_v26  ;;  %v1075_v26 = vsub.s32 2, %v1729_v0 }
 0x190   : > { %v998_v31 = vadd.f32 %v995_v29, %v989_v28 }
 0x191   : > { %v1009_v32 = vadd.f32 %v1004_v21, %v999_v30  ;;  %v1076_v28 = vrot.slane %v1735_v6, %v1075_v26 }
 0x192   : > { %v1008_v33 = vadd.f32 %v1005_v27, %v998_v31 }
 0x193   : > { %v1010_v34 = vsel %vm1002_vm6, %v1009_v32, -inf }
 0x194   : > { %v1011_v35 = vmax.f32 %v1008_v33, %v1010_v34 }
 0x196   : > { %v1012_v36 = vrot.slane %v1011_v35, 4 }
 0x198   : > { %v1013_v38 = vmax.f32 %v1011_v35, %v1012_v36 }
 0x19a   : > { %v1014_v39 = vrot.slane %v1013_v38, 2 }
 0x19c   : > { %v1015_v43 = vmax.f32 %v1013_v38, %v1014_v39 }
 0x19e   : > { %v1016_v44 = vrot.slane %v1015_v43, 1 }
 0x1a0   : > { %v1017_v48 = vmax.f32 %v1015_v43, %v1016_v44 }
 0x1a2   : > { %v1081_v49 = vadd.f32 %v1072_v45, %v1017_v48 }
 0x1a4   : > { %v1084_v52 = vmax.f32 %v1081_v49, 0.0  ;;  %v902_v53 = vpop.f32.mrb[8].mxu0  ;;  %v945_v54 = vpop.f32.mrb[8].mxu1 }
 0x1a5   : > { %v904_v55 = vpop.f32.mrb[9].mxu0  ;;  %v947_v56 = vpop.f32.mrb[9].mxu1  ;;  %v1020_v58 = vrot.slane %v902_v53, 1  ;;  %v1038_v60 = vrot.slane %v945_v54, 3 }
 0x1a6   : > { %v1089_v57 = vcombine.low %v1083_v51, %v1084_v52  ;;  %v906_v59 = vpop.f32.mrb[10].mxu0  ;;  %v949_v46 = vpop.f32.mrb[10].mxu1  ;;  %v1029_v61 = vrot.slane %v904_v55, 2  ;;  %v1048_v4 = vrot.slane %v947_v56, 4 }
 0x1a7   : > { %v1021_v62 = vrot.slane %v906_v59, 1  ;;  %v1039_v63 = vrot.slane %v949_v46, 3  ;;  %v908_v2 = vpop.f32.mrb[11].mxu0  ;;  %v951_v3 = vpop.f32.mrb[11].mxu1 }
 0x1a8   : > { %v1030_v5 = vrot.slane %v908_v2, 2  ;;  %v1049_v7 = vrot.slane %v951_v3, 4  ;;  %v1096_v8 = vrot.slane %v1089_v57, %v1095_v50 }
 0x1a9   : > { %v1022_v9 = vsel %vm956_vm5, %v1020_v58, %v1021_v62  ;;  %v1026_v10 = vadd.f32 %v1021_v62, %v865_v23  ;;  %v1040_v11 = vsel %vm1002_vm6, %v1038_v60, %v1039_v63 }
 0x1aa   : > { %v1025_v12 = vadd.f32 %v1022_v9, %v861_v15  ;;  %v1031_v13 = vsel %vm966_vm4, %v1029_v61, %v1030_v5  ;;  %v1050_v14 = vsel %vm1047_vm7, %v1048_v4, %v1049_v7 }
 0x1ab   : > { %v1035_v16 = vadd.f32 %v1030_v5, %v1026_v10 }
 0x1ac   : > { %v1034_v17 = vadd.f32 %v1031_v13, %v1025_v12 }
 0x1ad   : > { %v1044_v18 = vadd.f32 %v1039_v63, %v1035_v16 }
 0x1ae   : > { %v1043_v19 = vadd.f32 %v1040_v11, %v1034_v17 }
 0x1af   : > { %v1054_v20 = vadd.f32 %v1049_v7, %v1044_v18 }
 0x1b0   : > { %v1053_v21 = vadd.f32 %v1050_v14, %v1043_v19 }
 0x1b1   : > { %v1055_v22 = vsel %vm1047_vm7, %v1054_v20, -inf }
 0x1b2   : > { %v1056_v24 = vmax.f32 %v1053_v21, %v1055_v22 }
 0x1b4   : > { %v1057_v1 = vrot.slane %v1056_v24, 4 }
 0x1b6   : > { %v1058_v25 = vmax.f32 %v1056_v24, %v1057_v1 }
 0x1b8   : > { %v1059_v23 = vrot.slane %v1058_v25, 2 }
 0x1ba   : > { %v1060_v15 = vmax.f32 %v1058_v25, %v1059_v23 }
 0x1bc   : > { %v1061_v27 = vrot.slane %v1060_v15, 1 }
 0x1be   : > { %v1062_v29 = vmax.f32 %v1060_v15, %v1061_v27 }
 0x1c0   : > { %v1082_v30 = vadd.f32 %v1076_v28, %v1062_v29 }
 0x1c2   : > { %v1085_v31 = vmax.f32 %v1082_v30, 0.0 }
 0x1c4   : > { %v1103_v32 = vrot.slane %v1085_v31, %v1095_v50 }
 0x1c6   : > { %v1104_v33 = vcombine.low %v1096_v8, %v1103_v32 }
 0x1c8   : > { %v1111_v34 = vrot.slane %v1104_v33, %v1095_v50 }
 0x1ca   : > { %1117 = vst.msk [vmem:[%s168_s29] sm:$0x7] %vm1115_vm8, %v1111_v34 }
 0x1cb PF: > { %s13_s12 = sadd.s32 1, %s1418_s12  }
 0x1cc   : > { %p10_p4 = scmp.ge.s32.totalorder %s13_s12, 4  }
 0x1ce   :  { %12 = sbr.rel (!%p10_p4) target bundleno = 1 (0x1), region = 62 }

</bundles_post_ra>
